<compile_context>
chip_gen: v7x
topology: tpu7x:2x2x1
jax: 0.10.0
libtpu: 0.0.40
codegen_flags: <defaults>
</compile_context>

<pallas_src>
import math
from functools import partial

import jax
import jax.numpy as jnp
from jax.experimental import pallas as pl
from jax.experimental.pallas import tpu as pltpu


FP_DIM = {"ecfp": 64, "maccs": 32}


def _round_up(a, b):
    return (a + b - 1) // b * b


# ---------------------------------------------------------------------------
# Pallas kernel: per-node attentive fusion over K knowledge vectors
# ---------------------------------------------------------------------------
def _attentive_fusion_kernel(x_ref, gid_ref, wq_ref, kflat_ref, vflat_ref,
                             o_ref, *, num_k, d_attn, d_model, n_graphs):
    x = x_ref[...].astype(jnp.float32)                      # (TN, d_model)
    tn = x.shape[0]

    # q = x @ (Wq^T / sqrt(d_model)); scale already folded into the weight.
    q = jnp.dot(x, wq_ref[...].astype(jnp.float32),
                preferred_element_type=jnp.float32)         # (TN, d_attn)

    # In-kernel gather of per-graph K/V to nodes via a one-hot matmul
    # (replaces the per-node HBM broadcast of the old wrapper).
    gid = gid_ref[...]                                      # (TN, 1) int32
    graph_iota = jax.lax.broadcasted_iota(jnp.int32, (tn, n_graphs), 1)
    onehot = (graph_iota == gid).astype(jnp.float32)        # (TN, G)

    k_node = jnp.dot(onehot, kflat_ref[...],
                     preferred_element_type=jnp.float32)    # (TN, K*d_attn)
    v_node = jnp.dot(onehot, vflat_ref[...],
                     preferred_element_type=jnp.float32)    # (TN, K*d_model)

    # Attention scores over the K knowledge sources (static lane slices).
    scores = [
        jnp.sum(q * k_node[:, k * d_attn:(k + 1) * d_attn],
                axis=-1, keepdims=True)
        for k in range(num_k)
    ]
    scores = jnp.concatenate(scores, axis=-1)               # (TN, K)

    # Numerically stable softmax over K.
    m = jnp.max(scores, axis=-1, keepdims=True)
    e = jnp.exp(scores - m)
    attn = e / jnp.sum(e, axis=-1, keepdims=True)           # (TN, K)

    # out = attn @ V, then residual add.
    out = jnp.zeros((tn, d_model), jnp.float32)
    for k in range(num_k):
        out = out + attn[:, k:k + 1] * v_node[:, k * d_model:(k + 1) * d_model]

    o_ref[...] = (x + out).astype(o_ref.dtype)


def attentive_fusion_pallas(x, wq_t_scaled, graph_ids, k_graph, v_graph, *,
                            tn=1024):
    """x: [N, d_model]; wq_t_scaled: [d_model, d_attn] (scale folded in);
    graph_ids: [N] int; k_graph: [G, K, d_attn]; v_graph: [G, K, d_model]."""
    N, d_model = x.shape
    G, K, d_attn = k_graph.shape
    assert v_graph.shape == (G, K, d_model)

    # Large node tile for HBM-roofline efficiency, but never bigger than the
    # 8-aligned node count (avoids over-padding tiny inputs).
    tn = max(8, min(tn, _round_up(N, 8)))
    n_padded = _round_up(N, tn)
    pad = n_padded - N

    x_p = jnp.pad(x, ((0, pad), (0, 0))) if pad else x
    gid = graph_ids.astype(jnp.int32)
    gid_p = jnp.pad(gid, ((0, pad),)) if pad else gid       # pad rows -> graph 0
    gid_p = gid_p[:, None]                                  # (Np, 1)

    kflat = k_graph.reshape(G, K * d_attn).astype(jnp.float32)
    vflat = v_graph.reshape(G, K * d_model).astype(jnp.float32)

    kernel = partial(_attentive_fusion_kernel, num_k=K, d_attn=d_attn,
                     d_model=d_model, n_graphs=G)

    out = pl.pallas_call(
        kernel,
        out_shape=jax.ShapeDtypeStruct((n_padded, d_model), x.dtype),
        grid_spec=pltpu.PrefetchScalarGridSpec(
            num_scalar_prefetch=0,
            grid=(n_padded // tn,),
            in_specs=[
                pl.BlockSpec((tn, d_model), lambda i: (i, 0)),       # x tile
                pl.BlockSpec((tn, 1), lambda i: (i, 0)),             # graph ids
                pl.BlockSpec((d_model, d_attn), lambda i: (0, 0)),   # Wq^T*s
                pl.BlockSpec((G, K * d_attn), lambda i: (0, 0)),     # K (per graph)
                pl.BlockSpec((G, K * d_model), lambda i: (0, 0)),    # V (per graph)
            ],
            out_specs=pl.BlockSpec((tn, d_model), lambda i: (i, 0)),
        ),
        compiler_params=pltpu.CompilerParams(
            dimension_semantics=("parallel",)),
    )(x_p, gid_p, wq_t_scaled, kflat, vflat)

    return out[:N] if pad else out


# ---------------------------------------------------------------------------
# JAX glue: parameter init, per-graph knowledge projections
# ---------------------------------------------------------------------------
def init_params(key, d_model, knode_names):
    d_attn = d_model // 4
    params = {"k_proj_w": {}, "v_proj_w": {}, "v_proj_b": {}}
    keys = jax.random.split(key, 3 * len(knode_names) + 1)
    for i, name in enumerate(knode_names):
        fin = FP_DIM[name]
        bound_k = 1.0 / math.sqrt(fin)
        params["k_proj_w"][name] = jax.random.uniform(
            keys[3 * i], (d_attn, fin), jnp.float32, -bound_k, bound_k)
        params["v_proj_w"][name] = jax.random.uniform(
            keys[3 * i + 1], (d_model, fin), jnp.float32, -bound_k, bound_k)
        params["v_proj_b"][name] = jax.random.uniform(
            keys[3 * i + 2], (d_model,), jnp.float32, -bound_k, bound_k)
    bound_q = 1.0 / math.sqrt(d_model)
    params["wq"] = jax.random.uniform(
        keys[-1], (d_attn, d_model), jnp.float32, -bound_q, bound_q)
    return params


def build_graph_vectors(knode_feats, weights, biases=None):
    # Project per-graph fingerprints; stays per-graph (NO per-node broadcast).
    vecs = []
    for name, fp in knode_feats.items():
        feat = fp @ weights[name].T                          # (G, d_out)
        if biases is not None:
            feat = feat + biases[name]
        vecs.append(feat)
    return jnp.stack(vecs, axis=1)                           # (G, K, d_out)


def attentive_fusion_forward(params, graph_ids, x, knode_feats):
    if len(knode_feats) == 0:
        return x
    k_graph = build_graph_vectors(knode_feats, params["k_proj_w"])
    v_graph = build_graph_vectors(knode_feats, params["v_proj_w"],
                                  params["v_proj_b"])
    d_model = x.shape[-1]
    wq_t_scaled = params["wq"].T / (d_model ** 0.5)          # (d_model, d_attn)
    return attentive_fusion_pallas(x, wq_t_scaled, graph_ids, k_graph, v_graph)


def attentive_fusion_reference(params, graph_ids, x, knode_feats):
    # Pure-JAX reference mirroring the PyTorch forward (with node broadcast).
    if len(knode_feats) == 0:
        return x
    k_graph = build_graph_vectors(knode_feats, params["k_proj_w"])
    v_graph = build_graph_vectors(knode_feats, params["v_proj_w"],
                                  params["v_proj_b"])
    k_vectors = k_graph[graph_ids]                           # (N, K, d_attn)
    v_vectors = v_graph[graph_ids]                           # (N, K, d_model)
    d_model = x.shape[-1]
    q = (x @ params["wq"].T) / (d_model ** 0.5)              # (N, d_attn)
    attn = jnp.einsum("na,nka->nk", q, k_vectors)
    attn = jax.nn.softmax(attn, axis=-1)
    out = jnp.einsum("nk,nkd->nd", attn, v_vectors)
    return x + out


# ---------------------------------------------------------------------------
if __name__ == "__main__":
    d_model = 32
    knode_names = ["ecfp", "maccs"]

    # 2 graphs with unequal node counts (13 nodes total -> exercises padding).
    G = 2
    nodes_per_graph = [7, 6]
    N = sum(nodes_per_graph)
    graph_ids = jnp.concatenate([
        jnp.full((n,), g, dtype=jnp.int32) for g, n in enumerate(nodes_per_graph)
    ])

    key = jax.random.PRNGKey(0)
    kp, kx, k1, k2 = jax.random.split(key, 4)
    params = init_params(kp, d_model, knode_names)

    x = jax.random.normal(kx, (N, d_model), jnp.float32)
    knode_feats = {
        "ecfp": jax.random.normal(k1, (G, FP_DIM["ecfp"]), jnp.float32),
        "maccs": jax.random.normal(k2, (G, FP_DIM["maccs"]), jnp.float32),
    }

    out = attentive_fusion_forward(params, graph_ids, x, knode_feats)
    out = jax.block_until_ready(out)

    ref = attentive_fusion_reference(params, graph_ids, x, knode_feats)
    assert out.shape == (N, d_model)
    assert jnp.allclose(out, ref, atol=1e-4, rtol=1e-4), "mismatch vs reference"

    print("KERNEL_OK")
</pallas_src>

<mosaic_0001>
module attributes {stable_mosaic.version = 11 : i64} {
  func.func @_attentive_fusion_kernel(%arg0: i32, %arg1: memref<16x32xf32, #tpu.memory_space<vmem>>, %arg2: memref<16x1xi32, #tpu.memory_space<vmem>>, %arg3: memref<32x8xf32, #tpu.memory_space<vmem>>, %arg4: memref<2x16xf32, #tpu.memory_space<vmem>>, %arg5: memref<2x64xf32, #tpu.memory_space<vmem>>, %arg6: memref<16x32xf32, #tpu.memory_space<vmem>>) attributes {dimension_semantics = [#tpu.dimension_semantics<parallel>], iteration_bounds = array<i64: 1>, scalar_prefetch = 0 : i64, scratch_operands = 0 : i64, tpu.core_type = #tpu.core_type<tc>, window_params = [{transform_indices = @transform_0, window_bounds = array<i64: 16, 32>}, {transform_indices = @transform_1, window_bounds = array<i64: 16, 1>}, {pipeline_mode = #tpu.pipeline_mode<synchronous>, transform_indices = @transform_2, window_bounds = array<i64: 32, 8>}, {pipeline_mode = #tpu.pipeline_mode<synchronous>, transform_indices = @transform_3, window_bounds = array<i64: 2, 16>}, {pipeline_mode = #tpu.pipeline_mode<synchronous>, transform_indices = @transform_4, window_bounds = array<i64: 2, 64>}, {transform_indices = @transform_5, window_bounds = array<i64: 16, 32>}]} {
    %c0 = arith.constant 0 : index
    %c0_0 = arith.constant 0 : index
    %0 = vector.load %arg1[%c0, %c0_0] : memref<16x32xf32, #tpu.memory_space<vmem>>, vector<16x32xf32>
    %c0_1 = arith.constant 0 : index
    %c0_2 = arith.constant 0 : index
    %1 = vector.load %arg3[%c0_1, %c0_2] : memref<32x8xf32, #tpu.memory_space<vmem>>, vector<32x8xf32>
    %cst = arith.constant dense<0.000000e+00> : vector<16x8xf32>
    %2 = tpu.matmul %0, %1, %cst {dimension_numbers = #tpu.dot_dimension_numbers<[1], [0], [0], [1], [0, 0, 1, 1], [], []>} : vector<16x32xf32>, vector<32x8xf32>, vector<16x8xf32> -> vector<16x8xf32>
    %c0_3 = arith.constant 0 : index
    %c0_4 = arith.constant 0 : index
    %3 = vector.load %arg2[%c0_3, %c0_4] : memref<16x1xi32, #tpu.memory_space<vmem>>, vector<16x1xi32>
    %4 = tpu.iota {dimensions = array<i32: 1>} : vector<16x2xi32>
    %5 = vector.broadcast %3 : vector<16x1xi32> to vector<16x2xi32>
    %6 = arith.cmpi eq, %4, %5 : vector<16x2xi32>
    %7 = arith.extui %6 : vector<16x2xi1> to vector<16x2xi32>
    %8 = arith.sitofp %7 : vector<16x2xi32> to vector<16x2xf32>
    %c0_5 = arith.constant 0 : index
    %c0_6 = arith.constant 0 : index
    %9 = vector.load %arg4[%c0_5, %c0_6] : memref<2x16xf32, #tpu.memory_space<vmem>>, vector<2x16xf32>
    %cst_7 = arith.constant dense<0.000000e+00> : vector<16x16xf32>
    %10 = tpu.matmul %8, %9, %cst_7 {dimension_numbers = #tpu.dot_dimension_numbers<[1], [0], [0], [1], [0, 0, 1, 1], [], []>} : vector<16x2xf32>, vector<2x16xf32>, vector<16x16xf32> -> vector<16x16xf32>
    %c0_8 = arith.constant 0 : index
    %c0_9 = arith.constant 0 : index
    %11 = vector.load %arg5[%c0_8, %c0_9] : memref<2x64xf32, #tpu.memory_space<vmem>>, vector<2x64xf32>
    %cst_10 = arith.constant dense<0.000000e+00> : vector<16x64xf32>
    %12 = tpu.matmul %8, %11, %cst_10 {dimension_numbers = #tpu.dot_dimension_numbers<[1], [0], [0], [1], [0, 0, 1, 1], [], []>} : vector<16x2xf32>, vector<2x64xf32>, vector<16x64xf32> -> vector<16x64xf32>
    %13 = vector.extract_strided_slice %10 {offsets = [0, 0], sizes = [16, 8], strides = [1, 1]} : vector<16x16xf32> to vector<16x8xf32>
    %14 = arith.mulf %2, %13 : vector<16x8xf32>
    %cst_11 = arith.constant dense<0.000000e+00> : vector<16xf32>
    %15 = vector.multi_reduction <add>, %14, %cst_11 [1] : vector<16x8xf32> to vector<16xf32>
    %16 = vector.shape_cast %15 : vector<16xf32> to vector<16x1xf32>
    %17 = vector.extract_strided_slice %10 {offsets = [0, 8], sizes = [16, 8], strides = [1, 1]} : vector<16x16xf32> to vector<16x8xf32>
    %18 = arith.mulf %2, %17 : vector<16x8xf32>
    %cst_12 = arith.constant dense<0.000000e+00> : vector<16xf32>
    %19 = vector.multi_reduction <add>, %18, %cst_12 [1] : vector<16x8xf32> to vector<16xf32>
    %20 = vector.shape_cast %19 : vector<16xf32> to vector<16x1xf32>
    %21 = tpu.concatenate %16, %20 in 1 : vector<16x1xf32>, vector<16x1xf32> -> vector<16x2xf32>
    %cst_13 = arith.constant dense<0xFF800000> : vector<16xf32>
    %22 = vector.multi_reduction <maximumf>, %21, %cst_13 [1] : vector<16x2xf32> to vector<16xf32>
    %23 = vector.shape_cast %22 : vector<16xf32> to vector<16x1xf32>
    %24 = vector.broadcast %23 : vector<16x1xf32> to vector<16x2xf32>
    %25 = arith.subf %21, %24 : vector<16x2xf32>
    %26 = math.exp %25 : vector<16x2xf32>
    %cst_14 = arith.constant dense<0.000000e+00> : vector<16xf32>
    %27 = vector.multi_reduction <add>, %26, %cst_14 [1] : vector<16x2xf32> to vector<16xf32>
    %28 = vector.shape_cast %27 : vector<16xf32> to vector<16x1xf32>
    %29 = vector.broadcast %28 : vector<16x1xf32> to vector<16x2xf32>
    %30 = arith.divf %26, %29 : vector<16x2xf32>
    %cst_15 = arith.constant 0.000000e+00 : f32
    %31 = vector.broadcast %cst_15 : f32 to vector<16x32xf32>
    %32 = vector.extract_strided_slice %30 {offsets = [0, 0], sizes = [16, 1], strides = [1, 1]} : vector<16x2xf32> to vector<16x1xf32>
    %33 = vector.extract_strided_slice %12 {offsets = [0, 0], sizes = [16, 32], strides = [1, 1]} : vector<16x64xf32> to vector<16x32xf32>
    %34 = vector.broadcast %32 : vector<16x1xf32> to vector<16x32xf32>
    %35 = arith.mulf %34, %33 : vector<16x32xf32>
    %36 = arith.addf %31, %35 : vector<16x32xf32>
    %37 = vector.extract_strided_slice %30 {offsets = [0, 1], sizes = [16, 1], strides = [1, 1]} : vector<16x2xf32> to vector<16x1xf32>
    %38 = vector.extract_strided_slice %12 {offsets = [0, 32], sizes = [16, 32], strides = [1, 1]} : vector<16x64xf32> to vector<16x32xf32>
    %39 = vector.broadcast %37 : vector<16x1xf32> to vector<16x32xf32>
    %40 = arith.mulf %39, %38 : vector<16x32xf32>
    %41 = arith.addf %36, %40 : vector<16x32xf32>
    %42 = arith.addf %0, %41 : vector<16x32xf32>
    %c0_16 = arith.constant 0 : index
    %c0_17 = arith.constant 0 : index
    %43 = vector.load %arg6[%c0_16, %c0_17] : memref<16x32xf32, #tpu.memory_space<vmem>>, vector<16x32xf32>
    tpu.vector_store %arg6[%c0_16, %c0_17], %42 {strides = array<i32>} : memref<16x32xf32, #tpu.memory_space<vmem>>, vector<16x32xf32>,
    return
  }
  func.func @transform_0(%arg0: i32) -> (i32, i32) {
    %c0_i32 = arith.constant 0 : i32
    %c0_i32_0 = arith.constant 0 : i32
    return %arg0, %c0_i32 : i32, i32
  }
  func.func @transform_1(%arg0: i32) -> (i32, i32) {
    %c0_i32 = arith.constant 0 : i32
    %c0_i32_0 = arith.constant 0 : i32
    return %arg0, %c0_i32 : i32, i32
  }
  func.func @transform_2(%arg0: i32) -> (i32, i32) {
    %c0_i32 = arith.constant 0 : i32
    %c0_i32_0 = arith.constant 0 : i32
    %c0_i32_1 = arith.constant 0 : i32
    return %c0_i32, %c0_i32_0 : i32, i32
  }
  func.func @transform_3(%arg0: i32) -> (i32, i32) {
    %c0_i32 = arith.constant 0 : i32
    %c0_i32_0 = arith.constant 0 : i32
    %c0_i32_1 = arith.constant 0 : i32
    return %c0_i32, %c0_i32_0 : i32, i32
  }
  func.func @transform_4(%arg0: i32) -> (i32, i32) {
    %c0_i32 = arith.constant 0 : i32
    %c0_i32_0 = arith.constant 0 : i32
    %c0_i32_1 = arith.constant 0 : i32
    return %c0_i32, %c0_i32_0 : i32, i32
  }
  func.func @transform_5(%arg0: i32) -> (i32, i32) {
    %c0_i32 = arith.constant 0 : i32
    %c0_i32_0 = arith.constant 0 : i32
    return %arg0, %c0_i32 : i32, i32
  }
}

</mosaic_0001>

<bundles_post_ra>
// kernel: tpu_custom_call.1
= control target key start
LH: loop header
LB: loop body
LE: loop exit
PB: predicated region body
PF: predicated region fallthrough
CT: control target
= control target key end

     0   :  { %v490_v2 = vmov 0   ;;  %s608_s0 = inlined_call_operand.vmem [shape: f32[16,32], index: 0, kind: input, shape index: {}]   ;;  %s609_s1 = inlined_call_operand.vmem [shape: s32[16,1], index: 1, kind: input, shape index: {}]   ;;  %s610_s2 = inlined_call_operand.vmem [shape: f32[32,8], index: 2, kind: input, shape index: {}]   ;;  %s611_s3 = inlined_call_operand.vmem [shape: f32[2,16], index: 3, kind: input, shape index: {}]   ;;  %s612_s4 = inlined_call_operand.vmem [shape: f32[2,64], index: 4, kind: input, shape index: {}]   ;;  %s613_s5 = inlined_call_operand.hbm [shape: f32[16,32], index: 5, kind: output, shape index: {}]  }
   0x1   :  { %v109_v0 = vld [vmem:[%s609_s1] sm:$0xff]  ;;  %454 = vset.pattern.permute.xlu0 %v490_v2  ;;  %v24_v3 = vld [vmem:[%s610_s2 + $0x8] sm:$0xff]  ;;  %v25_v4 = vld [vmem:[%s610_s2 + $0x10] sm:$0xff] }
   0x2   :  { %v23_v1 = vld [vmem:[%s610_s2] sm:$0xff]  ;;  %v26_v5 = vld [vmem:[%s610_s2 + $0x18] sm:$0xff]  ;;  %114 = vperm.xlu0 %454, %v109_v0  }
   0x3   :  { %v438_v6 = vpack.c.bf16 %v24_v3, %v23_v1  ;;  %v442_v7 = vpack.c.bf16 %v26_v5, %v25_v4 }
   0x4   :  { %10 = vsyncpa [#allocation3], 0  ;;  %v110_v8 = vld [vmem:[%s609_s1 + $0x8] sm:$0xff]  ;;  %v125_v9 = vld [vmem:[%s611_s3] sm:$0x3]  ;;  %vm133_vm0 = vcmask 1041408   ;;  %v111_v13 = vlaneseq }
   0x5   :  { %439 = vmatprep.subr.bf16.mxu0 %v438_v6  ;;  %v553_v10 = vld [vmem:[%s608_s0] sm:$0xff]  ;;  %vm27_vm1 = vcmask 261120   ;;  %428 = vmatprep.subr.msk.mxu1 %vm133_vm0, %v125_v9  ;;  %v562_v11 = vld [vmem:[%s608_s0 + $0x8] sm:$0xff]  ;;  %vm126_vm2 = vcmask 15360   ;;  %v491_v16 = vmov 0.0   ;;  %vm293_vm5 = vcmask 64512  }
   0x6   :  { %441 = vmatpush3.bf16.msra.mxu0 %v438_v6  ;;  %117 = vperm.xlu0 %454, %v110_v8   ;;  %v212_v12 = vld [vmem:[%s612_s4] sm:$0x3]  ;;  %v112_v14 = vand.u32 127, %v111_v13  ;;  %s492_s0 = smov 120   ;;  %vm316_vm6 = vcmask 7168   ;;  %v493_v54 = vmov 1  }
   0x7   :  { %443 = vmatprep.subr.bf16.mxu0 %v442_v7  ;;  %425 = vmatprep.mubr.msk.f32.mxu0 %vm27_vm1, %v553_v10  ;;  %s494_s4 = smov 96   ;;  %s495_s10 = smov [#allocation2]  }
   0x8   :  { %429 = vmatpush3.msk.msra.mxu1 %vm133_vm0, %v125_v9  ;;  %455 = vset.pattern.permute.xlu1 %v493_v54  ;;  %s384_s11 = sshll.u32 %s495_s10, 4  ;;  %s385_s11 = int_to_ptr.vmem [resolvable:$true] %s384_s11 }
   0x9   :  { %433 = vmatprep.subr.msk.mxu1 %vm133_vm0, %v212_v12  ;;  %s466_s12 = scalar_lea.vmem %s385_s11, 256  ;;  %p471_p1 = scmp.lt.s32.totalorder %s385_s11, %s385_s11 }
   0xa   :  { %445 = vmatpush3.bf16.msra.mxu0 %v442_v7  ;;  %456 = vset.pattern.permute.xlu0 %v493_v54  ;;  %p467_p0 = scmp.ne.s32.totalorder %s385_s11, %s466_s12  ;;  %p472_p2 = scmp.lt.s32.totalorder %s466_s12, %s466_s12 }
   0xc   :  { %p473_p3 = por %p472_p2, %p471_p1 }
   0xd   :  { %426 = vmatmul.mubr.msk.f32.vlgmr.msra.gmra.mrb[0].mxu0 %vm27_vm1, %v562_v11 }
   0xe   :  { %p474_p4 = pnand %p473_p3, %p467_p0 }
  0x81   :  { %v115_v15 = vpop.permute.xlu0 %114 }
  0x82   :  { %vm119_vm3 = vcmp.eq.s32.totalorder %v112_v14, %v115_v15 }
  0x83   :  { %v397_v17 = vsel %vm119_vm3, 1.0, %v491_v16 }
  0x84   :  { %430 = vmatprep.mubr.msk.f32.mxu1 %vm126_vm2, %v397_v17 }
  0x85   :  { %v118_v18 = vpop.permute.xlu0 %117 }
  0x86   :  { %vm120_vm4 = vcmp.eq.s32.totalorder %v112_v14, %v118_v18 }
  0x87   :  { %v398_v19 = vsel %vm120_vm4, 1.0, %v491_v16 }
  0x88   :  { %431 = vmatmul.mubr.msk.f32.vlgmr.msra.gmra.mrb[0].mxu1 %vm126_vm2, %v398_v19 }
  0x89   :  { %435 = vmatprep.mubr.msk.f32.mxu1 %vm126_vm2, %v397_v17  ;;  %434 = vmatpush3.msk.msra.mxu1 %vm133_vm0, %v212_v12 }
  0x8c   :  { %436 = vmatmul.mubr.msk.f32.vlgmr.msra.gmra.mrb[2].mxu1 %vm126_vm2, %v398_v19 }
  0xe0   :  { %v427_v20 = vpop.f32.mrb[0].mxu0 }
  0xe1   :  { %v100_v21 = vpop.f32.mrb[1].mxu0 }
 0x15b   :  { %v432_v22 = vpop.f32.mrb[0].mxu1 }
 0x15c   :  { %v292_v23 = vmul.f32 %v432_v22, %v427_v20  ;;  %v203_v24 = vpop.f32.mrb[1].mxu1 }
 0x15d   :  { %v291_v25 = vmul.f32 %v203_v24, %v100_v21  ;;  %302 = vrot.lane.b32.xlu1 %v203_v24, %s492_s0 }
 0x15e   :  { %v297_v29 = vsel %vm293_vm5, %v292_v23, 0.0 }
 0x15f   :  { %v575_v26 = vpop.f32.mrb[2].mxu1  ;;  %v294_v27 = vsel %vm293_vm5, %v291_v25, 0.0 }
 0x160   :  { %v578_v28 = vpop.f32.mrb[3].mxu1  ;;  %295 = vadd.xlane.f32.xlu0 %v294_v27 }
 0x161   :  { %304 = vrot.lane.b32.xlu1 %v432_v22, %s492_s0 }
 0x185   :  { %298 = vadd.xlane.f32.xlu1 %v297_v29 }
 0x1cf   :  { %v303_v30 = vpop.permute.xlu1 %302 }
 0x1d0   :  { %v308_v31 = vmul.f32 %v303_v30, %v100_v21 }
 0x1d2   :  { %v310_v32 = vsel %vm293_vm5, %v308_v31, 0.0 }
 0x1d3   :  { %v305_v33 = vpop.permute.xlu1 %304  ;;  %311 = vadd.xlane.f32.xlu0 %v310_v32 }
 0x1d4   :  { %v309_v34 = vmul.f32 %v427_v20, %v305_v33 }
 0x1d6   :  { %v313_v35 = vsel %vm293_vm5, %v309_v34, 0.0 }
 0x1d7   :  { %314 = vadd.xlane.f32.xlu0 %v313_v35 }
 0x1ed   :  { %v296_v36 = vpop.xlane.xlu0 %295 }
 0x212   :  { %v299_v40 = vpop.xlane.xlu1 %298 }
 0x260   :  { %v312_v37 = vpop.xlane.xlu0 %311 }
 0x261   :  { %v317_v38 = vsel %vm316_vm6, %v296_v36, %v312_v37 }
 0x262   :  { %v319_v39 = vsel %vm126_vm2, %v317_v38, -inf }
 0x263   :  { %320 = vmax.xlane.f32.xlu1 %v319_v39 }
 0x264   :  { %v315_v41 = vpop.xlane.xlu0 %314 }
 0x265   :  { %v318_v42 = vsel %vm316_vm6, %v299_v40, %v315_v41 }
 0x266   :  { %v322_v43 = vsel %vm126_vm2, %v318_v42, -inf }
 0x267   :  { %323 = vmax.xlane.f32.xlu0 %v322_v43 }
 0x2f0   :  { %v321_v44 = vpop.xlane.xlu1 %320 }
 0x2f1   :  { %v325_v45 = vsub.f32 %v317_v38, %v321_v44 }
 0x2f3   :  { %v327_v46 = vmul.f32 1.442695, %v325_v45 }
 0x2f4   :  { %v324_v47 = vpop.xlane.xlu0 %323 }
 0x2f5   :  { %458 = vpow2.f32 %v327_v46  ;;  %v326_v48 = vsub.f32 %v318_v42, %v324_v47 }
 0x2f7   :  { %v329_v49 = vmul.f32 1.442695, %v326_v48 }
 0x2f9   :  { %460 = vpow2.f32 %v329_v49 }
 0x2ff   :  { %v459_v50 = vpop.eup %458 }
 0x300   :  { %v331_v51 = vsel %vm126_vm2, %v459_v50, 0.0 }
 0x301   :  { %332 = vadd.xlane.f32.xlu1 %v331_v51 }
 0x303   :  { %v461_v52 = vpop.eup %460 }
 0x304   :  { %v334_v53 = vsel %vm126_vm2, %v461_v52, 0.0 }
 0x305   :  { %335 = vadd.xlane.f32.xlu0 %v334_v53 }
 0x38e   :  { %v333_v55 = vpop.xlane.xlu1 %332 }
 0x38f   :  { %462 = vrcp.f32 %v333_v55 }
 0x392   :  { %v336_v56 = vpop.xlane.xlu0 %335 }
 0x393   :  { %464 = vrcp.f32 %v336_v56 }
 0x399   :  { %v463_v57 = vpop.eup %462 }
 0x39a   :  { %v338_v58 = vmul.f32 %v463_v57, %v459_v50 }
 0x39c   :  { %356 = vperm.xlu1 %455, %v338_v58  }
 0x39d   :  { %v465_v59 = vpop.eup %464 }
 0x39e   :  { %v340_v60 = vmul.f32 %v465_v59, %v461_v52 }
 0x3a0   :  { %457 = vset.pattern.permute.xlu1 %v490_v2  ;;  %360 = vperm.xlu0 %456, %v340_v60  }
 0x3a1   :  { %343 = vperm.xlu1 %457, %v338_v58  }
 0x3a5   :  { %348 = vperm.xlu1 %457, %v340_v60  }
 0x41b   :  { %v357_v61 = vpop.permute.xlu1 %356 }
 0x41c   :  { %v363_v62 = vmul.f32 %v357_v61, %v578_v28 }
 0x41e   :  { %367 = vrot.lane.b32.xlu1 %v363_v62, %s494_s4 }
 0x41f   :  { %v361_v63 = vpop.permute.xlu0 %360 }
 0x420   :  { %v364_v0 = vmul.f32 %v575_v26, %v361_v63  ;;  %v344_v1 = vpop.permute.xlu1 %343 }
 0x421   :  { %v351_v4 = vmul.f32 %v344_v1, %v578_v28 }
 0x422   :  { %369 = vrot.lane.b32.xlu1 %v364_v0, %s494_s4 }
 0x424   :  { %v349_v3 = vpop.permute.xlu1 %348 }
 0x425   :  { %v352_v2 = vmul.f32 %v575_v26, %v349_v3 }
 0x490   :  { %v368_v5 = vpop.permute.xlu1 %367 }
 0x491   :  { %v373_v6 = vadd.f32 %v368_v5, %v351_v4 }
 0x493   :  { %v375_v7 = vadd.f32 %v373_v6, %v553_v10 }
 0x494   :  { %v370_v8 = vpop.permute.xlu1 %369 }
 0x495   :  { %377 = vst.msk [vmem:[#allocation2] sm:$0xff] %vm27_vm1, %v375_v7  ;;  %v374_v9 = vadd.f32 %v370_v8, %v352_v2 }
 0x497   :  { %v376_v12 = vadd.f32 %v374_v9, %v562_v11 }
 0x499   :  { %378 = vst.msk [vmem:[#allocation2 + $0x8] sm:$0xff] %vm27_vm1, %v376_v12 }
 0x49a   :  { %477 = shalt.err (!%p474_p4)
}
 0x49b   :  { %s478_s15 = scalar_lea.hbm %s613_s5, 256 }
 0x49c   :  { %p479_p5 = scmp.ne.s32.totalorder %s613_s5, %s478_s15  ;;  %p482_p6 = scmp.lt.u32.totalorder %s478_s15, %s613_s5 }
 0x49e   :  { %p484_p7 = pnand %p482_p6, %p479_p5 }
 0x4a0   :  { %487 = shalt.err (!%p484_p7)
}
 0x4a1   :  { %s496_s20 = smov 128   ;;  %s497_s21 = smov 8  }
 0x4a2   :  { %390 = dma.vmem_to_hbm [thread:$0]  %s385_s11, 256, %s613_s5, [#allocation3], %s496_s20, %s496_s20, %s497_s21  }
 0x4a3   :  { %488 = dma.done.wait [#allocation3], 256  }
 0x4a4   :  { %489 = vsyncadd [#allocation3], 4294967040 }
 0x4a5   :  { %394 = vsyncpa [#allocation3], 1 }

</bundles_post_ra>
